<compile_context>
chip_gen: v5e
topology: v5e:2x2
jax: 0.10.0
libtpu: 0.0.40
codegen_flags: <defaults>
</compile_context>

<pallas_src>
import functools

import jax
import jax.numpy as jnp
from jax.experimental import pallas as pl
from jax.experimental.pallas import tpu as pltpu


def _focal_kernel(logits_ref, target_ref, out_ref, *, alpha, gamma, eps, oh_eps):
    # logits_ref: (C, TM) float, target_ref: (1, TM) int32, out_ref: (1, TM) f32
    x = logits_ref[...].astype(jnp.float32)   # accept bf16 inputs, compute in f32
    C, TM = x.shape

    # Numerically stable softmax over the class axis (axis 0).  One reciprocal
    # per lane column instead of C divides (exact; approx=True would shave a
    # little more EUP work at ~1e-4-level numeric deviation from the reference).
    m = jnp.max(x, axis=0, keepdims=True)
    e = jnp.exp(x - m)
    denom = jnp.sum(e, axis=0, keepdims=True)
    inv = pl.reciprocal(denom, approx=False)
    p = e * inv + eps                          # input_soft = softmax + eps

    # one_hot(target) + oh_eps  (matches the reference one_hot's trailing "+eps")
    cls_idx = jax.lax.broadcasted_iota(jnp.int32, (C, TM), 0)
    tgt = target_ref[...]                      # (1, TM), broadcasts over C
    one_hot = jnp.where(cls_idx == tgt, 1.0 + oh_eps, oh_eps)

    # Focal weight (1 - p)^gamma.  For (small) integer gamma -- the default
    # gamma=2 -- use repeated VPU multiplies instead of pow (= exp(g*log(.))),
    # which removes two EUP transcendentals per element and avoids NaNs from
    # the slightly negative (1 - p) of the argmax class (p = softmax + eps > 1).
    omp = 1.0 - p
    g_int = int(gamma)
    if float(gamma) == float(g_int) and 0 <= g_int <= 8:
        if g_int == 0:
            weight = jnp.ones_like(omp)
        else:
            weight = omp
            for _ in range(g_int - 1):
                weight = weight * omp
    else:
        weight = jnp.power(omp, gamma)

    focal = (-alpha) * weight * jnp.log(p)

    # Reduction over the class (sublane) axis -> lane-dense (1, TM) output row.
    out_ref[...] = jnp.sum(one_hot * focal, axis=0, keepdims=True).astype(out_ref.dtype)


def _pick_tile_hw(HW, C, N, vmem_budget_bytes=12 * 1024 * 1024):
    """Largest lane-dense pixel tile whose double-buffered working set fits the
    VMEM budget (v7x-safe), keeps roughly >= 8 grid steps for v7x's two
    TensorCores, and avoids wrapper-side padding whenever possible."""
    lane = 128
    # Per grid step: logits (C, t) f32 + target (1, t) i32 + out (1, t) f32,
    # each double-buffered by the Pallas pipeline.
    max_tile = vmem_budget_bytes // (2 * 4 * (C + 2))
    max_tile = max(lane, min(8192, max_tile))
    if HW <= max_tile:
        return HW                              # full row per batch element, no pad
    # Keep roughly >= 8 total grid steps, but never shrink below 512 lanes.
    cap = max(lane, min(max_tile, max(512, (N * HW) // 8)))
    # Prefer the largest 128-aligned tile that divides HW exactly (no padding).
    t = (cap // lane) * lane
    while t >= lane:
        if HW % t == 0:
            return t
        t -= lane
    return (cap // lane) * lane                # rare fallback: wrapper pads last tile


def focal_loss(logits, target, *, alpha, gamma=2.0, reduction="none",
               eps=1e-6, tile_hw=None):
    """logits: (N, C, H, W) float, target: (N, H, W) int.  Same semantics as
    the PyTorch FocalLoss.forward."""
    N, C, H, W = logits.shape
    assert target.shape == (N, H, W)
    HW = H * W

    # Free reshapes only -- no transpose, no extra HBM traffic.
    x = logits.reshape(N, C, HW)
    t = target.astype(jnp.int32).reshape(N, 1, HW)

    if tile_hw is None:
        tile_hw = _pick_tile_hw(HW, C, N)
    tile_hw = min(tile_hw, HW)

    n_tiles = pl.cdiv(HW, tile_hw)
    HW_pad = n_tiles * tile_hw
    if HW_pad != HW:
        # Rare fallback (HW has no 128-aligned divisor under the VMEM cap).
        x = jnp.pad(x, ((0, 0), (0, 0), (0, HW_pad - HW)))
        t = jnp.pad(t, ((0, 0), (0, 0), (0, HW_pad - HW)))

    kernel = functools.partial(
        _focal_kernel, alpha=float(alpha), gamma=float(gamma),
        eps=float(eps), oh_eps=1e-6,
    )

    M = N * HW
    in_bytes = x.dtype.itemsize
    cost = pl.CostEstimate(
        flops=10 * C * M,
        transcendentals=(2 * C + 1) * M,       # exp + log per class, 1 recip per pixel
        bytes_accessed=(in_bytes * C + 4 + 4) * M,
    )

    loss = pl.pallas_call(
        kernel,
        out_shape=jax.ShapeDtypeStruct((N, 1, HW_pad), jnp.float32),
        grid_spec=pltpu.PrefetchScalarGridSpec(
            num_scalar_prefetch=0,
            grid=(N, n_tiles),
            in_specs=[
                pl.BlockSpec((pl.Squeezed(), C, tile_hw), lambda n, i: (n, 0, i)),
                pl.BlockSpec((pl.Squeezed(), 1, tile_hw), lambda n, i: (n, 0, i)),
            ],
            out_specs=pl.BlockSpec((pl.Squeezed(), 1, tile_hw), lambda n, i: (n, 0, i)),
        ),
        compiler_params=pltpu.CompilerParams(
            dimension_semantics=("parallel", "parallel"),
            vmem_limit_bytes=32 * 1024 * 1024,
        ),
        cost_estimate=cost,
    )(x, t)

    loss_tmp = loss[:, 0, :HW].reshape(N, H, W)

    if reduction == "none":
        return loss_tmp
    elif reduction == "mean":
        return jnp.mean(loss_tmp)
    elif reduction == "sum":
        return jnp.sum(loss_tmp)
    else:
        raise NotImplementedError(f"Invalid reduction mode: {reduction}")


def _focal_loss_ref(logits, target, *, alpha, gamma=2.0, reduction="none", eps=1e-6):
    """Pure-JAX reference mirroring the PyTorch code, for validation."""
    N, C, H, W = logits.shape
    p = jax.nn.softmax(logits, axis=1) + eps
    oh = jax.nn.one_hot(target, C, axis=1, dtype=logits.dtype) + 1e-6
    weight = jnp.power(1.0 - p, gamma)
    focal = -alpha * weight * jnp.log(p)
    loss_tmp = jnp.sum(oh * focal, axis=1)
    if reduction == "none":
        return loss_tmp
    if reduction == "mean":
        return jnp.mean(loss_tmp)
    return jnp.sum(loss_tmp)


if __name__ == "__main__":
    key = jax.random.PRNGKey(0)
    k1, k2 = jax.random.split(key)

    N, C, H, W = 2, 4, 16, 16
    logits = jax.random.normal(k1, (N, C, H, W), dtype=jnp.float32)
    target = jax.random.randint(k2, (N, H, W), 0, C, dtype=jnp.int32)

    alpha, gamma = 0.5, 2.0

    # per-pixel ('none'), scalar ('mean'/'sum'), and an explicitly tiled call
    # that exercises the multi-step pixel grid (grid = (N, 2)).
    out_none = focal_loss(logits, target, alpha=alpha, gamma=gamma, reduction="none")
    out_mean = focal_loss(logits, target, alpha=alpha, gamma=gamma, reduction="mean")
    out_sum = focal_loss(logits, target, alpha=alpha, gamma=gamma, reduction="sum")
    out_tiled = focal_loss(logits, target, alpha=alpha, gamma=gamma,
                           reduction="none", tile_hw=128)
    jax.block_until_ready((out_none, out_mean, out_sum, out_tiled))

    ref_none = _focal_loss_ref(logits, target, alpha=alpha, gamma=gamma, reduction="none")
    ref_mean = _focal_loss_ref(logits, target, alpha=alpha, gamma=gamma, reduction="mean")
    ref_sum = _focal_loss_ref(logits, target, alpha=alpha, gamma=gamma, reduction="sum")

    assert out_none.shape == (N, H, W)
    assert jnp.allclose(out_none, ref_none, atol=1e-5, rtol=1e-5)
    assert jnp.allclose(out_tiled, ref_none, atol=1e-5, rtol=1e-5)
    assert jnp.allclose(out_mean, ref_mean, atol=1e-5, rtol=1e-5)
    assert jnp.allclose(out_sum, ref_sum, atol=1e-4, rtol=1e-5)

    print("KERNEL_OK")
</pallas_src>

<mosaic_0001>
module attributes {stable_mosaic.version = 11 : i64} {
  func.func @_focal_kernel(%arg0: i32, %arg1: i32, %arg2: memref<1x4x256xf32, #tpu.memory_space<vmem>>, %arg3: memref<1x1x256xi32, #tpu.memory_space<vmem>>, %arg4: memref<1x1x256xf32, #tpu.memory_space<vmem>>) attributes {dimension_semantics = [#tpu.dimension_semantics<parallel>, #tpu.dimension_semantics<parallel>], iteration_bounds = array<i64: 2, 1>, scalar_prefetch = 0 : i64, scratch_operands = 0 : i64, tpu.core_type = #tpu.core_type<tc>, window_params = [{transform_indices = @transform_0, window_bounds = array<i64: 1, 4, 256>}, {transform_indices = @transform_1, window_bounds = array<i64: 1, 1, 256>}, {transform_indices = @transform_2, window_bounds = array<i64: 1, 1, 256>}]} {
    %c0 = arith.constant 0 : index
    %c0_0 = arith.constant 0 : index
    %c0_1 = arith.constant 0 : index
    %0 = vector.load %arg2[%c0, %c0_0, %c0_1] : memref<1x4x256xf32, #tpu.memory_space<vmem>>, vector<1x4x256xf32>
    %1 = vector.shape_cast %0 : vector<1x4x256xf32> to vector<4x256xf32>
    %cst = arith.constant dense<0xFF800000> : vector<256xf32>
    %2 = vector.multi_reduction <maximumf>, %1, %cst [0] : vector<4x256xf32> to vector<256xf32>
    %3 = vector.shape_cast %2 : vector<256xf32> to vector<1x256xf32>
    %4 = vector.broadcast %3 : vector<1x256xf32> to vector<4x256xf32>
    %5 = arith.subf %1, %4 : vector<4x256xf32>
    %6 = math.exp %5 : vector<4x256xf32>
    %cst_2 = arith.constant dense<0.000000e+00> : vector<256xf32>
    %7 = vector.multi_reduction <add>, %6, %cst_2 [0] : vector<4x256xf32> to vector<256xf32>
    %8 = vector.shape_cast %7 : vector<256xf32> to vector<1x256xf32>
    %9 = tpu.reciprocal %8 : vector<1x256xf32> -> vector<1x256xf32>
    %10 = vector.broadcast %9 : vector<1x256xf32> to vector<4x256xf32>
    %11 = arith.mulf %6, %10 : vector<4x256xf32>
    %cst_3 = arith.constant 9.99999997E-7 : f32
    %12 = vector.broadcast %cst_3 : f32 to vector<4x256xf32>
    %13 = arith.addf %11, %12 : vector<4x256xf32>
    %14 = tpu.iota {dimensions = array<i32: 0>} : vector<4x256xi32>
    %c0_4 = arith.constant 0 : index
    %c0_5 = arith.constant 0 : index
    %c0_6 = arith.constant 0 : index
    %15 = vector.load %arg3[%c0_4, %c0_5, %c0_6] : memref<1x1x256xi32, #tpu.memory_space<vmem>>, vector<1x1x256xi32>
    %16 = vector.shape_cast %15 : vector<1x1x256xi32> to vector<1x256xi32>
    %17 = vector.broadcast %16 : vector<1x256xi32> to vector<4x256xi32>
    %18 = arith.cmpi eq, %14, %17 : vector<4x256xi32>
    %cst_7 = arith.constant 1.00000095 : f32
    %cst_8 = arith.constant 9.99999997E-7 : f32
    %19 = vector.broadcast %cst_7 : f32 to vector<4x256xf32>
    %20 = vector.broadcast %cst_8 : f32 to vector<4x256xf32>
    %21 = arith.select %18, %19, %20 : vector<4x256xi1>, vector<4x256xf32>
    %cst_9 = arith.constant 1.000000e+00 : f32
    %22 = vector.broadcast %cst_9 : f32 to vector<4x256xf32>
    %23 = arith.subf %22, %13 : vector<4x256xf32>
    %24 = arith.mulf %23, %23 : vector<4x256xf32>
    %cst_10 = arith.constant -5.000000e-01 : f32
    %25 = vector.broadcast %cst_10 : f32 to vector<4x256xf32>
    %26 = arith.mulf %25, %24 : vector<4x256xf32>
    %27 = math.log %13 : vector<4x256xf32>
    %28 = arith.mulf %26, %27 : vector<4x256xf32>
    %29 = arith.mulf %21, %28 : vector<4x256xf32>
    %cst_11 = arith.constant dense<0.000000e+00> : vector<256xf32>
    %30 = vector.multi_reduction <add>, %29, %cst_11 [0] : vector<4x256xf32> to vector<256xf32>
    %31 = vector.shape_cast %30 : vector<256xf32> to vector<1x256xf32>
    %c0_12 = arith.constant 0 : index
    %c0_13 = arith.constant 0 : index
    %c0_14 = arith.constant 0 : index
    %32 = vector.load %arg4[%c0_12, %c0_13, %c0_14] : memref<1x1x256xf32, #tpu.memory_space<vmem>>, vector<1x1x256xf32>
    %33 = vector.shape_cast %32 : vector<1x1x256xf32> to vector<1x256xf32>
    %34 = vector.shape_cast %31 : vector<1x256xf32> to vector<1x1x256xf32>
    tpu.vector_store %arg4[%c0_12, %c0_13, %c0_14], %34 {strides = array<i32>} : memref<1x1x256xf32, #tpu.memory_space<vmem>>, vector<1x1x256xf32>,
    return
  }
  func.func @transform_0(%arg0: i32, %arg1: i32) -> (i32, i32, i32) {
    %c0_i32 = arith.constant 0 : i32
    %c0_i32_0 = arith.constant 0 : i32
    return %arg0, %c0_i32, %arg1 : i32, i32, i32
  }
  func.func @transform_1(%arg0: i32, %arg1: i32) -> (i32, i32, i32) {
    %c0_i32 = arith.constant 0 : i32
    %c0_i32_0 = arith.constant 0 : i32
    return %arg0, %c0_i32, %arg1 : i32, i32, i32
  }
  func.func @transform_2(%arg0: i32, %arg1: i32) -> (i32, i32, i32) {
    %c0_i32 = arith.constant 0 : i32
    %c0_i32_0 = arith.constant 0 : i32
    return %arg0, %c0_i32, %arg1 : i32, i32, i32
  }
}

</mosaic_0001>

<bundles_post_ra>
// kernel: tpu_custom_call.1
= control target key start
LH: loop header
LB: loop body
LE: loop exit
PB: predicated region body
PF: predicated region fallthrough
CT: control target
= control target key end

     0   :  { %7 = vsyncpa [#allocation3], 0  ;;  %s896_s0 = inlined_call_operand.hbm [shape: f32[2,4,256], index: 0, kind: input, shape index: {}]   ;;  %s897_s1 = inlined_call_operand.hbm [shape: s32[2,1,256], index: 1, kind: input, shape index: {}]   ;;  %s898_s2 = inlined_call_operand.hbm [shape: f32[2,1,256], index: 2, kind: output, shape index: {}]  }
   0x1   :  { %9 = vsyncpa [#allocation3 + $0x1], 0 }
   0x2   :  { %10 = vsyncpa [#allocation6], 0 }
   0x3   :  { %12 = vsyncpa [#allocation6 + $0x1], 0 }
   0x4   :  { %13 = vsyncpa [#allocation4], 0 }
   0x5   :  { %15 = vsyncpa [#allocation4 + $0x1], 0  ;;  %s743_s9 = smov 0   ;;  %s745_s10 = smov 0  }
   0x6   :  { %s747_s11 = smov 0   ;;  %s749_s12 = smov 0  }
   0x7   :  { %s751_s13 = smov 0   ;;  %s753_s14 = smov 0  }
   0x8 LB: > { %s485_s15 = sadd.s32 4294967295, %s725_s14   ;;  %s486_s16 = sadd.s32 4294967294, %s725_s14   ;;  %s725_s14 = sphi %s753_s14, %s21_s14   ;;  %s721_s13 = sphi %s751_s13, %s908_s13   ;;  %s717_s12 = sphi %s749_s12, %s907_s12   ;;  %s713_s11 = sphi %s747_s11, %s906_s11   ;;  %s709_s10 = sphi %s745_s10, %s905_s10   ;;  %s705_s9 = sphi %s743_s9, %s904_s9  }
   0x9   : > { %s33_s17 = sadd.s32 1, %s721_s13  ;;  %s42_s18 = sadd.s32 1, %s713_s11 }
   0xa   : > { %p35_p0 = scmp.ge.s32.totalorder %s33_s17, 2  ;;  %p49_p1 = scmp.ne.s32.totalorder %s713_s11, %s709_s10 }
   0xb   : > { %p50_p2 = scmp.eq.s32.totalorder %s725_s14, 0  ;;  %p55_p3 = scmp.ne.s32.totalorder %s709_s10, %s705_s9 }
   0xc   : > { %s910_s17 = smov (%p35_p0, %s33_s17), 0  ;;  %p56_p5 = scmp.eq.s32.totalorder %s485_s15, 0 }
   0xd   : > { %p784_p4 = por %p50_p2, %p49_p1  ;;  %s37_s20 = ssub.s32 %s721_s13, %s910_s17 }
   0xe   : > { %p109_p6 = scmp.eq.s32.totalorder %s485_s15, 1  ;;  %p40_p7 = scmp.eq.s32.totalorder %s37_s20, 0 }
   0xf   : > { %p790_p8 = por %p56_p5, %p55_p3  ;;  %p115_p10 = scmp.eq.s32.totalorder %s486_s16, 1 }
  0x10   : > { %p794_p9 = por %p109_p6, %p49_p1  ;;  %p488_p12 = scmp.ge.s32.totalorder %s725_s14, 2 }
  0x11   : > { %s799_s23 = scalar_select %p40_p7, %s713_s11, %s42_s18  }
  0x12   : > { %p801_p11 = por %p115_p10, %p55_p3  ;;  %p520_p13 = scmp.lt.s32.totalorder %s725_s14, 2 }
  0x13   : > { %s135_s25 = sand.u32 1, %s713_s11   ;;  %s502_s27 = sshll.u32 %s721_s13, 3 }
  0x14   : > { %s489_s26 = sshll.u32 %s135_s25, 3  ;;  %s146_s30 = scalar_lea.hbm %s896_s0, %s502_s27 }
  0x15   : > { %s139_s3 = scalar_lea.vmem [#allocation2], %s489_s26  ;;  %s148_s5 = sshll.u32 %s146_s30, 4  ;;  %s149_s5 = int_to_ptr.hbm [resolvable:$true] %s148_s5 }
  0x16   : > { %s150_s4 = sshll.u32 %s139_s3, 4  ;;  %p814_p0 = pnand %p520_p13, %p784_p4  ;;  %s151_s4 = int_to_ptr.vmem [resolvable:$true] %s150_s4 }
  0x17   : > { %p494_p1 = scmp.ge.s32.totalorder %s725_s14, 1  ;;  %p176_p2 = scmp.lt.s32.totalorder %s725_s14, 3 }
  0x18   : > { %s136_s7 = scalar_lea.sflag [#allocation3], %s135_s25  ;;  %s492_s8 = sshll.u32 %s135_s25, 1 }
  0x19   : > { %512 = dma.hbm_to_vmem [thread:$0]  (!%p814_p0), %s149_s5, 128, %s151_s4, %s136_s7  }
  0x1a   : > { %p177_p3 = pnand %p494_p1, %p176_p2  ;;  %s493_s15 = sshll.u32 %s721_s13, 1 }
  0x1b   : > { %s167_s20 = scalar_lea.hbm %s897_s1, %s493_s15  ;;  %s161_s26 = scalar_lea.vmem [#allocation5], %s492_s8 }
  0x1c   : > { %s171_s19 = sshll.u32 %s161_s26, 4  ;;  %s169_s27 = sshll.u32 %s167_s20, 4  ;;  %s172_s19 = int_to_ptr.vmem [resolvable:$true] %s171_s19  ;;  %s170_s27 = int_to_ptr.hbm [resolvable:$true] %s169_s27 }
  0x1d   : > { %s158_s28 = scalar_lea.sflag [#allocation6], %s135_s25  ;;  %180 = sbr.rel (%p177_p3) target bundleno = 160 (0xa0), region = 28 }
  0x1e   : > { %515 = dma.hbm_to_vmem [thread:$0]  (!%p814_p0), %s170_s27, 32, %s172_s19, %s158_s28  }
  0x1f   : > { %s829_s29 = sand.u32 (!%p177_p3), 1, %s709_s10  }
  0x20   : > { %s495_s30 = sshll.u32 (!%p177_p3), %s829_s29, 3  ;;  %s183_s3 = scalar_lea.sflag (!%p177_p3), [#allocation3], %s829_s29 }
  0x21   : > { %s186_s4 = scalar_lea.vmem (!%p177_p3), [#allocation2], %s495_s30 }
  0x22   : > { %692 = dma.done.wait (%p790_p8), %s183_s3, 128  }
  0x23   : > { %694 = vsyncadd (%p790_p8), %s183_s3, 4294967168  ;;  %s496_s25 = sshll.u32 %s829_s29, 1  ;;  %s193_s5 = scalar_lea.sflag [#allocation6], %s829_s29 }
  0x24   : > { %s841_s6 = scalar_lea.vmem [#allocation5], %s496_s25 }
  0x25   : > { %696 = dma.done.wait (%p790_p8), %s193_s5, 32  }
  0x26   : > { %698 = vsyncadd (%p790_p8), %s193_s5, 4294967264  ;;  %v226_v0 = vld [vmem:[%s186_s4] sm:$0xff]  ;;  %vm233_vm0 = vcmask 1043456   ;;  %s499_s21 = sshll.u32 %s717_s12, 1  ;;  %s222_s16 = scalar_lea.vmem [#allocation7], %s496_s25  ;;  %vm351_vm11 = vcmask 1040384  }
  0x27   : > { %228 = vst [vmem:[#allocation1] ss:$2 sm:$0xff] %v226_v0  ;;  %s372_s15 = scalar_lea.hbm %s898_s2, %s499_s21  ;;  %s374_s18 = sshll.u32 %s222_s16, 4  ;;  %s375_s18 = int_to_ptr.vmem [resolvable:$true] %s374_s18 }
  0x28   : > { %s376_s20 = sshll.u32 %s372_s15, 4  ;;  %s360_s12 = scalar_lea.sflag [#allocation4], %s829_s29  ;;  %s377_s20 = int_to_ptr.hbm [resolvable:$true] %s376_s20 }
  0x29   : > { %s653_s26 = sshra.s32 %s377_s20, 4  ;;  %s659_s30 = scalar_lea.hbm %s898_s2, 4  ;;  %s654_s26 = int_to_ptr.hbm [resolvable:$true] %s653_s26 }
  0x2a   : > { %s655_s19 = scalar_lea.hbm %s654_s26, 2  ;;  %p660_p7 = scmp.lt.s32.totalorder %s654_s26, %s898_s2 }
  0x2b   : > { %p656_p4 = scmp.ne.s32.totalorder %s654_s26, %s655_s19  ;;  %p661_p8 = scmp.lt.s32.totalorder %s659_s30, %s655_s19 }
  0x2d   : > { %p657_p5 = pnand %p656_p4, %p794_p9  ;;  %p662_p10 = por %p661_p8, %p660_p7 }
  0x2e   : > { %v229_v1 = vld.sshfl [vmem:[#allocation1] sm:$0xff pattern:$0x75316420]  ;;  %v230_v2 = vld.sshfl [vmem:[#allocation1 + $0x8] sm:$0xff pattern:$0x75316420] }
  0x2f   : > { %v234_v3 = vsel %vm233_vm0, %v229_v1, -inf  ;;  %v241_v4 = vsel %vm233_vm0, %v230_v2, -inf  ;;  %v313_v2 = vld [vmem:[%s841_s6] sm:$0x3]  ;;  %p658_p6 = pneg %p657_p5 }
  0x30   : > { %v235_v5 = vrot.slane %v234_v3, 4  ;;  %v242_v6 = vrot.slane %v241_v4, 4 }
  0x31   : > { %p663_p13 = pnand %p662_p10, %p658_p6 }
  0x32   : > { %v236_v7 = vmax.f32 %v234_v3, %v235_v5  ;;  %v243_v8 = vmax.f32 %v241_v4, %v242_v6 }
  0x34   : > { %v237_v9 = vrot.slane %v236_v7, 2  ;;  %v244_v10 = vrot.slane %v243_v8, 2 }
  0x36   : > { %v238_v11 = vmax.f32 %v236_v7, %v237_v9  ;;  %v245_v12 = vmax.f32 %v243_v8, %v244_v10  ;;  %v314_v7 = vperm.slane %v313_v2, 0  ;;  %v315_v8 = vperm.slane %v313_v2, 1 }
  0x37   : > { %v727_v9 = vmov 1e-06  }
  0x38   : > { %v239_v13 = vrot.slane %v238_v11, 1  ;;  %v246_v14 = vrot.slane %v245_v12, 1 }
  0x3a   : > { %v247_v15 = vmax.f32 %v245_v12, %v246_v14  ;;  %v240_v16 = vmax.f32 %v238_v11, %v239_v13 }
  0x3c   : > { %v250_v17 = vrot.slane %v247_v15, 4 }
  0x3e   : > { %v251_v18 = vsel %vm233_vm0, %v240_v16, %v250_v17 }
  0x3f   : > { %v253_v19 = vsub.f32 %v226_v0, %v251_v18  ;;  %v311_v0 = vlaneseq }
  0x41   : > { %v254_v20 = vmul.f32 1.442695, %v253_v19  ;;  %v312_v6 = vshrl.u32 %v311_v0, 7  ;;  %vm356_vm12 = vcmp.lt.s32.totalorder %v311_v0, 256 }
  0x43   : > { %571 = vpow2.f32 %v254_v20  ;;  %vm316_vm9 = vcmp.eq.s32.totalorder %v312_v6, %v314_v7  ;;  %vm317_vm10 = vcmp.eq.s32.totalorder %v312_v6, %v315_v8 }
  0x44   : > { %v318_v10 = vsel %vm316_vm9, 1.000001, %v727_v9  ;;  %v319_v11 = vsel %vm317_vm10, 1.000001, %v727_v9 }
  0x49   : > { %v572_v21 = vpop.eup %571 }
  0x4a   : > { %257 = vst [vmem:[#allocation1] ss:$2 sm:$0xff] %v572_v21 }
  0x51   : > { %v258_v22 = vld.sshfl [vmem:[#allocation1] sm:$0xff pattern:$0x75316420]  ;;  %v259_v23 = vld.sshfl [vmem:[#allocation1 + $0x8] sm:$0xff pattern:$0x75316420] }
  0x52   : > { %v262_v24 = vsel %vm233_vm0, %v258_v22, 0.0  ;;  %v269_v25 = vsel %vm233_vm0, %v259_v23, 0.0 }
  0x53   : > { %v263_v26 = vrot.slane %v262_v24, 4  ;;  %v270_v27 = vrot.slane %v269_v25, 4 }
  0x55   : > { %v264_v28 = vadd.f32 %v263_v26, %v262_v24  ;;  %v271_v29 = vadd.f32 %v270_v27, %v269_v25 }
  0x57   : > { %v265_v30 = vrot.slane %v264_v28, 2  ;;  %v272_v31 = vrot.slane %v271_v29, 2 }
  0x59   : > { %v266_v32 = vadd.f32 %v265_v30, %v264_v28  ;;  %v273_v33 = vadd.f32 %v272_v31, %v271_v29 }
  0x5b   : > { %v267_v34 = vrot.slane %v266_v32, 1  ;;  %v274_v35 = vrot.slane %v273_v33, 1 }
  0x5d   : > { %v268_v36 = vadd.f32 %v267_v34, %v266_v32  ;;  %v275_v37 = vadd.f32 %v274_v35, %v273_v33 }
  0x5f   : > { %573 = vrcp.f32 %v268_v36  ;;  %v301_v45 = vand.u32 2147483648, %v275_v37  ;;  %v299_v47 = vand.u32 2147483647, %v275_v37  ;;  %vm281_vm3 = vweird.f32 %v268_v36 }
  0x60   : > { %575 = vrcp.f32 %v275_v37  ;;  %v287_v49 = vand.u32 2147483648, %v268_v36  ;;  %v285_v50 = vand.u32 2147483647, %v268_v36  ;;  %vm295_vm5 = vweird.f32 %v275_v37 }
  0x61   : > { %v302_v52 = vor.u32 1.1754944e-38, %v301_v45  ;;  %vm300_vm7 = vcmp.eq.f32.partialorder %v299_v47, 8.507059e+37 }
  0x62   : > { %v288_v55 = vor.u32 1.1754944e-38, %v287_v49  ;;  %vm286_vm8 = vcmp.eq.f32.partialorder %v285_v50, 8.507059e+37 }
  0x65   : > { %v574_v38 = vpop.eup %573 }
  0x66   : > { %v576_v39 = vpop.eup %575  ;;  %v277_v40 = vmul.f32 %v574_v38, %v268_v36  ;;  %vm282_vm1 = vweird.f32 %v574_v38 }
  0x67   : > { %v291_v41 = vmul.f32 %v576_v39, %v275_v37  ;;  %vm296_vm2 = vweird.f32 %v576_v39  ;;  %vm283_vm4 = vmor %vm281_vm3, %vm282_vm1 }
  0x68   : > { %v278_v42 = vsub.f32 1.0, %v277_v40  ;;  %vm297_vm6 = vmor %vm295_vm5, %vm296_vm2 }
  0x69   : > { %v292_v43 = vsub.f32 1.0, %v291_v41 }
  0x6a   : > { %v279_v44 = vmul.f32 %v574_v38, %v278_v42 }
  0x6b   : > { %v293_v46 = vmul.f32 %v576_v39, %v292_v43 }
  0x6c   : > { %v280_v48 = vadd.f32 %v574_v38, %v279_v44 }
  0x6d   : > { %v294_v51 = vadd.f32 %v576_v39, %v293_v46 }
  0x6e   : > { %v284_v53 = vsel %vm283_vm4, %v574_v38, %v280_v48 }
  0x6f   : > { %v298_v54 = vsel %vm297_vm6, %v576_v39, %v294_v51  ;;  %v289_v58 = vsel %vm286_vm8, %v288_v55, %v284_v53 }
  0x70   : > { %v303_v56 = vsel %vm300_vm7, %v302_v52, %v298_v54 }
  0x71   : > { %v306_v57 = vrot.slane %v303_v56, 4 }
  0x73   : > { %v307_v59 = vsel %vm233_vm0, %v289_v58, %v306_v57 }
  0x74   : > { %v309_v60 = vmul.f32 %v572_v21, %v307_v59 }
  0x76   : > { %v310_v61 = vadd.f32 1e-06, %v309_v60 }
  0x78   : > { %v320_v62 = vsub.f32 1.0, %v310_v61  ;;  %577 = vlog2.f32 %v310_v61 }
  0x7a   : > { %v321_v63 = vmul.f32 %v320_v62, %v320_v62 }
  0x7c   : > { %v322_v3 = vmul.f32 -0.5, %v321_v63 }
  0x7e   : > { %v578_v1 = vpop.eup %577 }
  0x7f   : > { %v324_v4 = vmul.f32 0.6931472, %v578_v1 }
  0x81   : > { %v325_v5 = vmul.f32 %v324_v4, %v322_v3 }
  0x83   : > { %327 = vst [vmem:[#allocation1] ss:$2 sm:$0xff] %v325_v5 }
  0x8a   : > { %v328_v12 = vld.sshfl [vmem:[#allocation1] sm:$0xff pattern:$0x75316420]  ;;  %v329_v13 = vld.sshfl [vmem:[#allocation1 + $0x8] sm:$0xff pattern:$0x75316420] }
  0x8b   : > { %v332_v14 = vmul.f32 %v328_v12, %v318_v10  ;;  %v333_v15 = vmul.f32 %v329_v13, %v319_v11 }
  0x8d   : > { %v334_v16 = vsel %vm233_vm0, %v332_v14, 0.0  ;;  %v341_v17 = vsel %vm233_vm0, %v333_v15, 0.0 }
  0x8e   : > { %v335_v18 = vrot.slane %v334_v16, 4  ;;  %v342_v19 = vrot.slane %v341_v17, 4 }
  0x90   : > { %v336_v20 = vadd.f32 %v335_v18, %v334_v16  ;;  %v343_v21 = vadd.f32 %v342_v19, %v341_v17 }
  0x92   : > { %v337_v22 = vrot.slane %v336_v20, 2  ;;  %v344_v23 = vrot.slane %v343_v21, 2 }
  0x94   : > { %v338_v24 = vadd.f32 %v337_v22, %v336_v20  ;;  %v345_v25 = vadd.f32 %v344_v23, %v343_v21 }
  0x96   : > { %v339_v26 = vrot.slane %v338_v24, 1  ;;  %v346_v27 = vrot.slane %v345_v25, 1 }
  0x98   : > { %v347_v28 = vadd.f32 %v346_v27, %v345_v25  ;;  %v340_v29 = vadd.f32 %v339_v26, %v338_v24 }
  0x9a   : > { %v350_v30 = vrot.slane %v347_v28, 7 }
  0x9c   : > { %v352_v31 = vsel %vm351_vm11, %v340_v29, %v350_v30 }
  0x9d   : > { %358 = vst.msk [vmem:[%s222_s16] sm:$0x3] %vm356_vm12, %v352_v31 }
  0x9e   : > { %666 = shalt.err (!%p663_p13)
}
  0x9f   : > { %507 = dma.vmem_to_hbm [thread:$0]  (%p794_p9), %s375_s18, 32, %s377_s20, %s360_s12  }
  0xa0 PF: > { %s388_s29 = sand.u32 1, %s705_s9   ;;  %p517_p0 = pnand %p488_p12, %p801_p11 }
  0xa1   : > { %s389_s25 = scalar_lea.sflag [#allocation4], %s388_s29 }
  0xa2   : > { %p518_p1 = pneg %p517_p0 }
  0xa4   : > { %700 = dma.done.wait (%p518_p1), %s389_s25, 32  }
  0xa5   : > { %702 = vsyncadd (%p518_p1), %s389_s25, 4294967264  ;;  %s21_s14 = sadd.s32 1, %s725_s14   ;;  %s904_s9 = smov %s709_s10 }
  0xa6   : > { %p18_p2 = scmp.ge.s32.totalorder %s21_s14, 4   ;;  %s905_s10 = smov %s713_s11 }
  0xa7   : > { %s906_s11 = smov %s799_s23  ;;  %s907_s12 = smov %s721_s13 }
  0xa8   : > { %s908_s13 = smov %s910_s17  ;;  %20 = sbr.rel (!%p18_p2) target bundleno = 8 (0x8), region = 86 }
  0xad   :  { %395 = vsyncpa [#allocation3], 1 }
  0xae   :  { %397 = vsyncpa [#allocation3 + $0x1], 1 }
  0xaf   :  { %398 = vsyncpa [#allocation6], 1 }
  0xb0   :  { %400 = vsyncpa [#allocation6 + $0x1], 1 }
  0xb1   :  { %401 = vsyncpa [#allocation4], 1 }
  0xb2   :  { %403 = vsyncpa [#allocation4 + $0x1], 1 }

</bundles_post_ra>
